<compile_context>
chip_gen: v5e
topology: v5e:2x2
jax: 0.10.0
libtpu: 0.0.40
codegen_flags: <defaults>
</compile_context>

<pallas_src>
import functools

import jax
import jax.numpy as jnp
from jax.experimental import pallas as pl
from jax.experimental.pallas import tpu as pltpu


def _round_up(n: int, m: int) -> int:
    return ((n + m - 1) // m) * m


def _kmax_kernel(x_ref, o_ref, *, k: int):
    # x_ref: (TM, L) row tile; o_ref: (TM, k) output tile.
    x = x_ref[...]                                   # compute in the input dtype
    L = x.shape[1]
    # (1, L) position iota, broadcast against rows inside the compares.
    idx = jax.lax.broadcasted_iota(jnp.int32, (1, L), 1)
    if jnp.issubdtype(x.dtype, jnp.floating):
        neg = jnp.array(-jnp.inf, dtype=x.dtype)
    else:
        neg = jnp.array(jnp.iinfo(x.dtype).min, dtype=x.dtype)

    cur = x
    # Unrolled: each step takes the per-row max and masks out only the FIRST
    # position attaining it (duplicates survive, matching torch.topk values).
    for i in range(k):
        m = jnp.max(cur, axis=1, keepdims=True)                      # (TM, 1)
        o_ref[:, i:i + 1] = m.astype(o_ref.dtype)
        if i + 1 < k:  # skip the masking pass on the final extraction
            first = jnp.min(jnp.where(cur == m, idx, L), axis=1, keepdims=True)
            cur = jnp.where(idx == first, neg, cur)


def kmax_pooling(x: jax.Array, k: int, *, max_block_rows: int = 512,
                 target_block_bytes: int = 2 * 1024 * 1024) -> jax.Array:
    """Pallas TPU implementation of KMaxPooling.forward (top-k values, dim=2)."""
    B, C, L = x.shape
    assert 1 <= k <= L, "k must be in [1, L]"

    rows = B * C
    itemsize = jnp.dtype(x.dtype).itemsize
    # Rows per tile: multiple of 8, capped by the per-block VMEM budget.
    rows_budget = max(8, (target_block_bytes // max(1, L * itemsize)) // 8 * 8)
    tm = min(max_block_rows, rows_budget, _round_up(rows, 8))
    rows_pad = _round_up(rows, tm)
    num_tiles = rows_pad // tm
    # v7x has 2 TensorCores; keep the parallel grid axis even so neither idles.
    if num_tiles > 1 and num_tiles % 2 == 1:
        num_tiles += 1
        rows_pad = num_tiles * tm

    xf = x.reshape(rows, L)
    if rows_pad != rows:
        xf = jnp.pad(xf, ((0, rows_pad - rows), (0, 0)))

    out = pl.pallas_call(
        functools.partial(_kmax_kernel, k=k),
        out_shape=jax.ShapeDtypeStruct((rows_pad, k), x.dtype),
        grid=(num_tiles,),
        in_specs=[pl.BlockSpec((tm, L), lambda t: (t, 0))],
        out_specs=pl.BlockSpec((tm, k), lambda t: (t, 0)),
        compiler_params=pltpu.CompilerParams(
            dimension_semantics=("parallel",),
            # Working set: double-buffered input block + cur + transient int32
            # where-temp (~6x block bytes ~ 12 MiB).  Set the limit explicitly
            # so the 16 MiB default scoped VMEM on v5e never binds; 32 MiB is
            # safe on all generations (v7x physical = 64 MiB).
            vmem_limit_bytes=32 * 1024 * 1024,
        ),
    )(xf)

    return out[:rows].reshape(B, C, k)


if __name__ == "__main__":
    key = jax.random.PRNGKey(0)

    B, C, L, K = 2, 4, 16, 3
    x = jax.random.normal(key, (B, C, L), dtype=jnp.float32)
    out = jax.block_until_ready(kmax_pooling(x, K))
    ref = jax.lax.top_k(x, K)[0]        # pure-JAX reference (sorted descending)
    assert out.shape == (B, C, K), out.shape
    assert jnp.allclose(out, ref), "mismatch vs reference top-k"

    # Second case: row count not a multiple of 8 (exercises the padding path).
    x2 = jax.random.normal(jax.random.PRNGKey(1), (2, 5, 32), dtype=jnp.float32)
    out2 = jax.block_until_ready(kmax_pooling(x2, 4))
    ref2 = jax.lax.top_k(x2, 4)[0]
    assert jnp.allclose(out2, ref2), "mismatch vs reference top-k (padded rows)"

    print("KERNEL_OK")
</pallas_src>

<mosaic_0001>
module attributes {stable_mosaic.version = 11 : i64} {
  func.func @_kmax_kernel(%arg0: i32, %arg1: memref<8x16xf32, #tpu.memory_space<vmem>>, %arg2: memref<8x3xf32, #tpu.memory_space<vmem>>) attributes {dimension_semantics = [#tpu.dimension_semantics<parallel>], iteration_bounds = array<i64: 1>, scalar_prefetch = 0 : i64, scratch_operands = 0 : i64, tpu.core_type = #tpu.core_type<tc>, window_params = [{transform_indices = @transform_0, window_bounds = array<i64: 8, 16>}, {transform_indices = @transform_1, window_bounds = array<i64: 8, 3>}]} {
    %c0 = arith.constant 0 : index
    %c0_0 = arith.constant 0 : index
    %0 = vector.load %arg1[%c0, %c0_0] : memref<8x16xf32, #tpu.memory_space<vmem>>, vector<8x16xf32>
    %1 = tpu.iota {dimensions = array<i32: 1>} : vector<1x16xi32>
    %cst = arith.constant dense<0xFF800000> : vector<8xf32>
    %2 = vector.multi_reduction <maximumf>, %0, %cst [1] : vector<8x16xf32> to vector<8xf32>
    %3 = vector.shape_cast %2 : vector<8xf32> to vector<8x1xf32>
    %c0_1 = arith.constant 0 : index
    %c0_2 = arith.constant 0 : index
    %4 = vector.load %arg2[%c0_1, %c0_2] : memref<8x3xf32, #tpu.memory_space<vmem>>, vector<8x1xf32>
    tpu.vector_store %arg2[%c0_1, %c0_2], %3 {strides = array<i32>} : memref<8x3xf32, #tpu.memory_space<vmem>>, vector<8x1xf32>,
    %5 = vector.broadcast %3 : vector<8x1xf32> to vector<8x16xf32>
    %6 = arith.cmpf oeq, %0, %5 : vector<8x16xf32>
    %c16_i32 = arith.constant 16 : i32
    %7 = vector.shape_cast %1 : vector<1x16xi32> to vector<1x16xi32>
    %8 = vector.broadcast %7 : vector<1x16xi32> to vector<8x16xi32>
    %9 = vector.broadcast %c16_i32 : i32 to vector<8x16xi32>
    %10 = arith.select %6, %8, %9 : vector<8x16xi1>, vector<8x16xi32>
    %cst_3 = arith.constant dense<2147483647> : vector<8xi32>
    %11 = vector.multi_reduction <minsi>, %10, %cst_3 [1] : vector<8x16xi32> to vector<8xi32>
    %12 = vector.shape_cast %11 : vector<8xi32> to vector<8x1xi32>
    %13 = vector.broadcast %1 : vector<1x16xi32> to vector<8x16xi32>
    %14 = vector.broadcast %12 : vector<8x1xi32> to vector<8x16xi32>
    %15 = arith.cmpi eq, %13, %14 : vector<8x16xi32>
    %cst_4 = arith.constant 0xFF800000 : f32
    %16 = vector.broadcast %cst_4 : f32 to vector<8x16xf32>
    %17 = arith.select %15, %16, %0 : vector<8x16xi1>, vector<8x16xf32>
    %cst_5 = arith.constant dense<0xFF800000> : vector<8xf32>
    %18 = vector.multi_reduction <maximumf>, %17, %cst_5 [1] : vector<8x16xf32> to vector<8xf32>
    %19 = vector.shape_cast %18 : vector<8xf32> to vector<8x1xf32>
    %c0_6 = arith.constant 0 : index
    %c1 = arith.constant 1 : index
    %20 = vector.load %arg2[%c0_6, %c1] : memref<8x3xf32, #tpu.memory_space<vmem>>, vector<8x1xf32>
    tpu.vector_store %arg2[%c0_6, %c1], %19 {strides = array<i32>} : memref<8x3xf32, #tpu.memory_space<vmem>>, vector<8x1xf32>,
    %21 = vector.broadcast %19 : vector<8x1xf32> to vector<8x16xf32>
    %22 = arith.cmpf oeq, %17, %21 : vector<8x16xf32>
    %c16_i32_7 = arith.constant 16 : i32
    %23 = vector.shape_cast %1 : vector<1x16xi32> to vector<1x16xi32>
    %24 = vector.broadcast %23 : vector<1x16xi32> to vector<8x16xi32>
    %25 = vector.broadcast %c16_i32_7 : i32 to vector<8x16xi32>
    %26 = arith.select %22, %24, %25 : vector<8x16xi1>, vector<8x16xi32>
    %cst_8 = arith.constant dense<2147483647> : vector<8xi32>
    %27 = vector.multi_reduction <minsi>, %26, %cst_8 [1] : vector<8x16xi32> to vector<8xi32>
    %28 = vector.shape_cast %27 : vector<8xi32> to vector<8x1xi32>
    %29 = vector.broadcast %1 : vector<1x16xi32> to vector<8x16xi32>
    %30 = vector.broadcast %28 : vector<8x1xi32> to vector<8x16xi32>
    %31 = arith.cmpi eq, %29, %30 : vector<8x16xi32>
    %cst_9 = arith.constant 0xFF800000 : f32
    %32 = vector.broadcast %cst_9 : f32 to vector<8x16xf32>
    %33 = arith.select %31, %32, %17 : vector<8x16xi1>, vector<8x16xf32>
    %cst_10 = arith.constant dense<0xFF800000> : vector<8xf32>
    %34 = vector.multi_reduction <maximumf>, %33, %cst_10 [1] : vector<8x16xf32> to vector<8xf32>
    %35 = vector.shape_cast %34 : vector<8xf32> to vector<8x1xf32>
    %c0_11 = arith.constant 0 : index
    %c2 = arith.constant 2 : index
    %36 = vector.load %arg2[%c0_11, %c2] : memref<8x3xf32, #tpu.memory_space<vmem>>, vector<8x1xf32>
    tpu.vector_store %arg2[%c0_11, %c2], %35 {strides = array<i32>} : memref<8x3xf32, #tpu.memory_space<vmem>>, vector<8x1xf32>,
    return
  }
  func.func @transform_0(%arg0: i32) -> (i32, i32) {
    %c0_i32 = arith.constant 0 : i32
    %c0_i32_0 = arith.constant 0 : i32
    return %arg0, %c0_i32 : i32, i32
  }
  func.func @transform_1(%arg0: i32) -> (i32, i32) {
    %c0_i32 = arith.constant 0 : i32
    %c0_i32_0 = arith.constant 0 : i32
    return %arg0, %c0_i32 : i32, i32
  }
}

</mosaic_0001>

<bundles_post_ra>
// kernel: tpu_custom_call.1
= control target key start
LH: loop header
LB: loop body
LE: loop exit
PB: predicated region body
PF: predicated region fallthrough
CT: control target
= control target key end

     0   :  { %6 = vsyncpa [#allocation3], 0  ;;  %s111_s9 = smov [#allocation2]   ;;  %s139_s0 = inlined_call_operand.hbm [shape: f32[8,16], index: 0, kind: input, shape index: {}]   ;;  %s140_s1 = inlined_call_operand.vmem [shape: f32[8,3], index: 1, kind: output, shape index: {}]  }
   0x1   :  { %s12_s8 = sshll.u32 %s139_s0, 4  ;;  %s14_s10 = sshll.u32 %s111_s9, 4  ;;  %s13_s8 = int_to_ptr.hbm [resolvable:$true] %s12_s8  ;;  %s15_s10 = int_to_ptr.vmem [resolvable:$true] %s14_s10 }
   0x2   :  { %17 = dma.hbm_to_vmem [thread:$0]  %s13_s8, 128, %s15_s10, [#allocation3]  }
   0x3   :  { %109 = dma.done.wait [#allocation3], 128  }
   0x4   :  { %110 = vsyncadd [#allocation3], 4294967168  ;;  %vm25_vm0 = vcmask 130048   ;;  %v22_v0 = vld [vmem:[#allocation2] sm:$0xff]  ;;  %v23_v2 = vlaneseq  ;;  %vm29_vm1 = vcmask 7168   ;;  %vm53_vm5 = vcmask 15368  }
   0x5   :  { %v26_v1 = vsel %vm25_vm0, %v22_v0, -inf  ;;  %vm77_vm9 = vcmask 23568  }
   0x6   :  { %27 = vmax.xlane.f32.xlu0 %v26_v1  ;;  %v24_v3 = vand.u32 127, %v23_v2 }
  0x79   :  { %v28_v4 = vpop.xlane.xlu0 %27 }
  0x7a   :  { %30 = vst.msk [vmem:[%s140_s1] sm:$0xff] %vm29_vm1, %v28_v4  ;;  %vm31_vm2 = vcmp.eq.f32.partialorder %v22_v0, %v28_v4 }
  0x7b   :  { %v32_v5 = vsel %vm31_vm2, %v24_v3, 16 }
  0x7c   :  { %v33_v6 = vsel %vm25_vm0, %v32_v5, 2147483647 }
  0x7d   :  { %v35_v7 = vshra.s32 %v33_v6, 16  ;;  %v34_v9 = vand.u32 65535, %v33_v6 }
  0x7f   :  { %v37_v8 = vcvt.s32.f32 %v35_v7  ;;  %v36_v11 = vcvt.s32.f32 %v34_v9 }
  0x81   :  { %38 = vmin.xlane.f32.xlu0 %v37_v8 }
  0xf4   :  { %v39_v10 = vpop.xlane.xlu0 %38 }
  0xf5   :  { %vm40_vm3 = vcmp.eq.f32.partialorder %v37_v8, %v39_v10  ;;  %v45_v13 = vcvt.f32.s32 %v39_v10 }
  0xf6   :  { %v41_v12 = vsel %vm40_vm3, %v36_v11, inf }
  0xf7   :  { %42 = vmin.xlane.f32.xlu1 %v41_v12  ;;  %v46_v15 = vshll.u32 %v45_v13, 16 }
 0x16a   :  { %v43_v14 = vpop.xlane.xlu1 %42 }
 0x16b   :  { %v44_v16 = vcvt.f32.s32 %v43_v14 }
 0x16d   :  { %v47_v17 = vadd.s32 %v46_v15, %v44_v16 }
 0x16f   :  { %vm48_vm4 = vcmp.eq.s32.totalorder %v24_v3, %v47_v17 }
 0x170   :  { %v49_v18 = vsel %vm48_vm4, -inf, %v22_v0 }
 0x171   :  { %v50_v19 = vsel %vm25_vm0, %v49_v18, -inf }
 0x172   :  { %51 = vmax.xlane.f32.xlu1 %v50_v19 }
 0x1e5   :  { %v52_v20 = vpop.xlane.xlu1 %51 }
 0x1e6   :  { %54 = vst.msk [vmem:[%s140_s1] sm:$0xff] %vm53_vm5, %v52_v20  ;;  %vm55_vm6 = vcmp.eq.f32.partialorder %v49_v18, %v52_v20 }
 0x1e7   :  { %v56_v21 = vsel %vm55_vm6, %v24_v3, 16 }
 0x1e8   :  { %v57_v22 = vsel %vm25_vm0, %v56_v21, 2147483647 }
 0x1e9   :  { %v59_v23 = vshra.s32 %v57_v22, 16  ;;  %v58_v25 = vand.u32 65535, %v57_v22 }
 0x1eb   :  { %v61_v24 = vcvt.s32.f32 %v59_v23  ;;  %v60_v27 = vcvt.s32.f32 %v58_v25 }
 0x1ed   :  { %62 = vmin.xlane.f32.xlu2 %v61_v24 }
 0x260   :  { %v63_v26 = vpop.xlane.xlu2 %62 }
 0x261   :  { %vm64_vm7 = vcmp.eq.f32.partialorder %v61_v24, %v63_v26  ;;  %v69_v29 = vcvt.f32.s32 %v63_v26 }
 0x262   :  { %v65_v28 = vsel %vm64_vm7, %v60_v27, inf }
 0x263   :  { %66 = vmin.xlane.f32.xlu2 %v65_v28  ;;  %v70_v31 = vshll.u32 %v69_v29, 16 }
 0x2d6   :  { %v67_v30 = vpop.xlane.xlu2 %66 }
 0x2d7   :  { %v68_v32 = vcvt.f32.s32 %v67_v30 }
 0x2d9   :  { %v71_v33 = vadd.s32 %v70_v31, %v68_v32 }
 0x2db   :  { %vm72_vm8 = vcmp.eq.s32.totalorder %v24_v3, %v71_v33 }
 0x2dc   :  { %v73_v34 = vsel %vm72_vm8, -inf, %v49_v18 }
 0x2dd   :  { %v74_v35 = vsel %vm25_vm0, %v73_v34, -inf }
 0x2de   :  { %75 = vmax.xlane.f32.xlu0 %v74_v35 }
 0x351   :  { %v76_v36 = vpop.xlane.xlu0 %75 }
 0x352   :  { %78 = vst.msk [vmem:[%s140_s1] sm:$0xff] %vm77_vm9, %v76_v36 }
 0x353   :  { %83 = vsyncpa [#allocation3], 1 }

</bundles_post_ra>
